<compile_context>
chip_gen: v6e
topology: v6e:2x2x1
jax: 0.10.0
libtpu: 0.0.40
codegen_flags: <defaults>
</compile_context>

<pallas_src>
import jax
import jax.numpy as jnp
from jax.experimental import pallas as pl
from jax.experimental.pallas import tpu as pltpu

_LANES = 128        # lane-dense last dim (vreg lane width)
_MAX_TM = 8192      # row tile: 8192*128*4B = 4 MiB per block per stream
_SMALL_N = 1 << 16  # below ~64K elements a fused XLA elementwise op wins


def _fma_x_only_kernel(params_ref, x_ref, o_ref):
    # params_ref: SMEM f32[2] = [a, c];   out = x*a + c
    o_ref[...] = x_ref[...] * params_ref[0] + params_ref[1]


def _fma_x_other_kernel(params_ref, x_ref, other_ref, o_ref):
    # params_ref: SMEM f32[3] = [a, w2, c];   out = x*a + other*w2 + c
    o_ref[...] = (x_ref[...] * params_ref[0]
                  + other_ref[...] * params_ref[1]
                  + params_ref[2])


def _call_kernel(kernel, params, arrays, rows, tm):
    """Lane-dense (rows, 128) streaming FMA over a 1-D row-tile grid."""
    n_tiles = pl.cdiv(rows, tm)          # ragged last block is masked by Pallas
    blk = pl.BlockSpec((tm, _LANES), lambda i, p: (i, 0))
    n_streams = len(arrays) + 1          # inputs + output
    # Double-buffered footprint: streams x 2 bufs x block, plus a small margin.
    vmem_bytes = n_streams * 2 * tm * _LANES * 4 + (4 << 20)
    cost = pl.CostEstimate(
        flops=3 * rows * _LANES,
        transcendentals=0,
        bytes_accessed=n_streams * rows * _LANES * 4,
    )
    # TODO(synk): on v7x (2 TCs/chip) switch this axis to pltpu.CORE_PARALLEL
    # (or pl.core_map over pltpu.create_tensorcore_mesh) so both TensorCores
    # stream; kept at PARALLEL here for portability across v5e/v6e.
    return pl.pallas_call(
        kernel,
        out_shape=jax.ShapeDtypeStruct((rows, _LANES), jnp.float32),
        grid_spec=pltpu.PrefetchScalarGridSpec(
            num_scalar_prefetch=1,        # `params` -> SMEM, passed first
            grid=(n_tiles,),
            in_specs=[blk for _ in arrays],
            out_specs=blk,
        ),
        compiler_params=pltpu.CompilerParams(
            dimension_semantics=(pltpu.PARALLEL,),
            vmem_limit_bytes=vmem_bytes,
        ),
        cost_estimate=cost,
    )(params, *arrays)


def model_forward(x, other, w1, b1, w2, b2):
    """x: (..., 1) f32, `other` broadcastable against x. Matches the module."""
    x = jnp.asarray(x, jnp.float32)
    other = jnp.asarray(other, jnp.float32)
    assert x.shape[-1] == 1, "Linear(1, 1) expects last dim == 1"

    w1s = jnp.asarray(w1, jnp.float32).reshape(())
    b1s = jnp.asarray(b1, jnp.float32).reshape(())
    w2s = jnp.asarray(w2, jnp.float32).reshape(())
    b2s = jnp.asarray(b2, jnp.float32).reshape(())

    # Fold the two Linear(1,1)s: ((x*w1 + b1) + other)*w2 + b2
    #                           =  x*(w1*w2) + other*w2 + (b1*w2 + b2)
    a = w1s * w2s
    c = b1s * w2s + b2s

    out_shape = jnp.broadcast_shapes(x.shape, other.shape)
    n = x.size
    scalar_other = (other.size == 1)
    full_other = (other.shape == x.shape)

    # Fast path: tiny tensors, or `other` with partial broadcast / larger than
    # x. A single fused XLA elementwise op does one HBM pass with no broadcast
    # materialization and no pallas_call launch overhead.
    if n <= _SMALL_N or out_shape != x.shape or not (scalar_other or full_other):
        return x * a + other * w2s + c

    # Lane-dense Pallas path: flatten (free — contiguous) to (rows, 128).
    flat = x.reshape(-1)
    rem = n % _LANES
    if rem:
        # Rare <128-element lane tail: pad once, slice off at the end.
        flat = jnp.pad(flat, (0, _LANES - rem))
    rows = flat.shape[0] // _LANES
    x2 = flat.reshape(rows, _LANES)
    tm = rows if rows <= _MAX_TM else _MAX_TM

    if scalar_other:
        # Broadcast-scalar `other` (as in the spec): fold into the constant so
        # the kernel streams exactly one HBM input.
        params = jnp.stack([a, c + other.reshape(()) * w2s])
        out2 = _call_kernel(_fma_x_only_kernel, params, (x2,), rows, tm)
    else:
        oflat = other.reshape(-1)
        if rem:
            oflat = jnp.pad(oflat, (0, _LANES - rem))
        o2 = oflat.reshape(rows, _LANES)
        params = jnp.stack([a, w2s, c])
        out2 = _call_kernel(_fma_x_other_kernel, params, (x2, o2), rows, tm)

    out = out2.reshape(-1)
    if rem:
        out = out[:n]
    return out.reshape(x.shape)


if __name__ == "__main__":
    key = jax.random.PRNGKey(0)
    k_x, k_o, k_w1, k_b1, k_w2, k_b2, k_x2, k_o2, k_x3, k_o3 = jax.random.split(key, 10)

    # Deterministic parameter init (PyTorch Linear(1,1) default ~ U(-1, 1)).
    w1 = jax.random.uniform(k_w1, (1, 1), minval=-1.0, maxval=1.0)
    b1 = jax.random.uniform(k_b1, (1,), minval=-1.0, maxval=1.0)
    w2 = jax.random.uniform(k_w2, (1, 1), minval=-1.0, maxval=1.0)
    b2 = jax.random.uniform(k_b2, (1,), minval=-1.0, maxval=1.0)

    def ref_fn(x_, other_):
        v1 = x_ @ w1.T + b1
        v2 = v1 + other_
        return v2 @ w2.T + b2

    def check(x_, other_, atol=1e-4, rtol=1e-5):
        out = jax.block_until_ready(model_forward(x_, other_, w1, b1, w2, b2))
        ref = ref_fn(x_, other_)
        assert out.shape == ref.shape, (out.shape, ref.shape)
        assert jnp.allclose(out, ref, atol=atol, rtol=rtol)

    # 1) Small shapes consistent with the module (batch=2, seq=8, features=1),
    #    spec-style broadcast-scalar `other` -> fused fast path.
    B, S, F = 2, 8, 1
    x_small = jax.random.normal(k_x, (B, S, F), dtype=jnp.float32) * 5.0
    other_scalar = jnp.array([[[-8.0]]], dtype=jnp.float32)
    check(x_small, other_scalar)

    # 2) Small, full-shape `other` -> fused fast path.
    other_small = jax.random.normal(k_o, (B, S, F), dtype=jnp.float32) * 3.0
    check(x_small, other_small)

    # 3) Larger input, scalar `other` -> single-stream Pallas kernel
    #    (n = 131072, lane-aligned, single block).
    x_big = jax.random.normal(k_x2, (16, 8192, 1), dtype=jnp.float32) * 5.0
    check(x_big, other_scalar)

    # 4) Larger input with a lane tail (n = 150003), full-shape `other`
    #    -> two-stream Pallas kernel + tail padding.
    x_tail = jax.random.normal(k_x3, (3, 50001, 1), dtype=jnp.float32) * 5.0
    other_tail = jax.random.normal(k_o3, (3, 50001, 1), dtype=jnp.float32) * 3.0
    check(x_tail, other_tail)

    # 5) Multi-block tiled path with a ragged last row block
    #    (rows = 12288 > 8192, grid = 2), full-shape `other`.
    x_tiled = jax.random.normal(k_o2, (12, 131072, 1), dtype=jnp.float32) * 5.0
    other_tiled = jax.random.normal(k_x2, (12, 131072, 1), dtype=jnp.float32) * 3.0
    check(x_tiled, other_tiled)

    print("KERNEL_OK")
</pallas_src>

<mosaic_0001>
module attributes {stable_mosaic.version = 11 : i64} {
  func.func @_fma_x_only_kernel(%arg0: i32, %arg1: memref<2xf32, #tpu.memory_space<smem>>, %arg2: memref<1024x128xf32, #tpu.memory_space<vmem>>, %arg3: memref<1024x128xf32, #tpu.memory_space<vmem>>) attributes {dimension_semantics = [#tpu.dimension_semantics<parallel>], iteration_bounds = array<i64: 1>, scalar_prefetch = 1 : i64, scratch_operands = 0 : i64, tpu.core_type = #tpu.core_type<tc>, window_params = [{transform_indices = @transform_0, window_bounds = array<i64: 1024, 128>}, {transform_indices = @transform_1, window_bounds = array<i64: 1024, 128>}]} {
    %c0 = arith.constant 0 : index
    %c0_0 = arith.constant 0 : index
    %0 = vector.load %arg2[%c0, %c0_0] : memref<1024x128xf32, #tpu.memory_space<vmem>>, vector<1024x128xf32>
    %c0_1 = arith.constant 0 : index
    %1 = memref.load %arg1[%c0_1] : memref<2xf32, #tpu.memory_space<smem>>
    %2 = vector.broadcast %1 : f32 to vector<1024x128xf32>
    %3 = arith.mulf %0, %2 : vector<1024x128xf32>
    %c1 = arith.constant 1 : index
    %4 = memref.load %arg1[%c1] : memref<2xf32, #tpu.memory_space<smem>>
    %5 = vector.broadcast %4 : f32 to vector<1024x128xf32>
    %6 = arith.addf %3, %5 : vector<1024x128xf32>
    %c0_2 = arith.constant 0 : index
    %c0_3 = arith.constant 0 : index
    %7 = vector.load %arg3[%c0_2, %c0_3] : memref<1024x128xf32, #tpu.memory_space<vmem>>, vector<1024x128xf32>
    tpu.vector_store %arg3[%c0_2, %c0_3], %6 {strides = array<i32>} : memref<1024x128xf32, #tpu.memory_space<vmem>>, vector<1024x128xf32>,
    return
  }
  func.func @transform_0(%arg0: i32, %arg1: memref<2xf32, #tpu.memory_space<smem>>) -> (i32, i32) {
    %c0_i32 = arith.constant 0 : i32
    %c0_i32_0 = arith.constant 0 : i32
    return %arg0, %c0_i32 : i32, i32
  }
  func.func @transform_1(%arg0: i32, %arg1: memref<2xf32, #tpu.memory_space<smem>>) -> (i32, i32) {
    %c0_i32 = arith.constant 0 : i32
    %c0_i32_0 = arith.constant 0 : i32
    return %arg0, %c0_i32 : i32, i32
  }
}

</mosaic_0001>

<bundles_post_ra>
// kernel: tpu_custom_call.1
= control target key start
LH: loop header
LB: loop body
LE: loop exit
PB: predicated region body
PF: predicated region fallthrough
CT: control target
= control target key end

     0   :  { %s621_s9 = smov [#allocation3]   ;;  %s916_s0 = inlined_call_operand.hbm [shape: f32[2], index: 0, kind: input, shape index: {}]   ;;  %s917_s1 = inlined_call_operand.hbm [shape: f32[1024,128], index: 1, kind: input, shape index: {}]   ;;  %s918_s2 = inlined_call_operand.hbm [shape: f32[1024,128], index: 2, kind: output, shape index: {}]  }
   0x1   :  { %8 = dma.hbm_to_smem %s916_s0, 16, %s621_s9, [#allocation2] }
   0x2   :  { %615 = dma.done.wait [#allocation2], 16 }
   0x3   :  { %616 = vsyncadd [#allocation2], 4294967280 }
   0x4   :  { %10 = sfence }
   0x5   :  { %11 = vsyncpa [#allocation5], 0 }
   0x6   :  { %12 = vsyncpa [#allocation6], 0  ;;  %s622_s12 = smov [#allocation4]  }
   0x7   :  { %s18_s13 = sshll.u32 %s622_s12, 4  ;;  %s19_s13 = int_to_ptr.vmem [resolvable:$true] %s18_s13 }
   0x8   :  { %s583_s14 = scalar_lea.vmem %s19_s13, 16384  ;;  %p588_p1 = scmp.lt.s32.totalorder %s19_s13, %s19_s13 }
   0x9   :  { %p584_p0 = scmp.ne.s32.totalorder %s19_s13, %s583_s14  ;;  %p589_p2 = scmp.lt.s32.totalorder %s583_s14, %s583_s14 }
   0xb   :  { %p590_p3 = por %p589_p2, %p588_p1 }
   0xd   :  { %p591_p4 = pnand %p590_p3, %p584_p0 }
   0xf   :  { %594 = shalt.err (!%p591_p4)
}
  0x10   :  { %s623_s15 = smov 128   ;;  %s624_s16 = smov 8  }
  0x11   :  { %24 = dma.hbm_to_vmem [thread:$0]  %s917_s1, 16384, %s19_s13, [#allocation5], %s623_s15, %s623_s15, %s624_s16  }
  0x12   :  { %617 = dma.done.wait [#allocation5], 16384  }
  0x13   :  { %618 = vsyncadd [#allocation5], 4294950912  ;;  %s156_s18 = sld [smem:[#allocation3]]  ;;  %v28_v0 = vld [vmem:[#allocation4] sm:$0xff]  ;;  %v29_v2 = vld [vmem:[#allocation4 + $0x8] sm:$0xff]  ;;  %s625_s1 = smov [#allocation7]  }
  0x14   :  { %s561_s19 = sld [smem:[#allocation3 + $0x1]]  ;;  %v30_v3 = vld [vmem:[#allocation4 + $0x10] sm:$0xff]  ;;  %v31_v8 = vld [vmem:[#allocation4 + $0x18] sm:$0xff]  ;;  %v32_v9 = vld [vmem:[#allocation4 + $0x20] sm:$0xff]  ;;  %s549_s20 = sshll.u32 %s625_s1, 4  ;;  %s550_s20 = int_to_ptr.vmem [resolvable:$true] %s549_s20 }
  0x15   :  { %v33_v10 = vld [vmem:[#allocation4 + $0x28] sm:$0xff]  ;;  %v34_v14 = vld [vmem:[#allocation4 + $0x30] sm:$0xff]  ;;  %v35_v15 = vld [vmem:[#allocation4 + $0x38] sm:$0xff]  ;;  %s595_s21 = scalar_lea.vmem %s550_s20, 16384  ;;  %p600_p6 = scmp.lt.s32.totalorder %s550_s20, %s550_s20 }
  0x16   :  { %v36_v16 = vld [vmem:[#allocation4 + $0x40] sm:$0xff]  ;;  %v37_v21 = vld [vmem:[#allocation4 + $0x48] sm:$0xff]  ;;  %v38_v22 = vld [vmem:[#allocation4 + $0x50] sm:$0xff]  ;;  %p596_p5 = scmp.ne.s32.totalorder %s550_s20, %s595_s21  ;;  %p601_p7 = scmp.lt.s32.totalorder %s595_s21, %s595_s21 }
  0x17   :  { %v39_v23 = vld [vmem:[#allocation4 + $0x58] sm:$0xff]  ;;  %v40_v28 = vld [vmem:[#allocation4 + $0x60] sm:$0xff]  ;;  %v41_v29 = vld [vmem:[#allocation4 + $0x68] sm:$0xff] }
  0x18   :  { %v42_v30 = vld [vmem:[#allocation4 + $0x70] sm:$0xff]  ;;  %v43_v35 = vld [vmem:[#allocation4 + $0x78] sm:$0xff]  ;;  %v44_v40 = vld [vmem:[#allocation4 + $0x80] sm:$0xff]  ;;  %p602_p8 = por %p601_p7, %p600_p6 }
  0x19   :  { %v650_v1 = vstv %s156_s18  ;;  %v45_v41 = vld [vmem:[#allocation4 + $0x88] sm:$0xff]  ;;  %v46_v42 = vld [vmem:[#allocation4 + $0x90] sm:$0xff]  ;;  %v47_v47 = vld [vmem:[#allocation4 + $0x98] sm:$0xff] }
  0x1a   :  { %v158_v4 = vmul.f32 %v650_v1, %v28_v0  ;;  %v653_v5 = vstv %s561_s19  ;;  %v159_v6 = vmul.f32 %v650_v1, %v29_v2  ;;  %v160_v7 = vmul.f32 %v650_v1, %v30_v3  ;;  %v48_v48 = vld [vmem:[#allocation4 + $0xa0] sm:$0xff]  ;;  %v49_v49 = vld [vmem:[#allocation4 + $0xa8] sm:$0xff]  ;;  %v50_v54 = vld [vmem:[#allocation4 + $0xb0] sm:$0xff]  ;;  %p603_p9 = pnand %p602_p8, %p596_p5 }
  0x1b   :  { %v161_v11 = vmul.f32 %v650_v1, %v31_v8  ;;  %v162_v12 = vmul.f32 %v650_v1, %v32_v9  ;;  %v163_v13 = vmul.f32 %v650_v1, %v33_v10  ;;  %v164_v20 = vmul.f32 %v650_v1, %v34_v14  ;;  %v51_v59 = vld [vmem:[#allocation4 + $0xb8] sm:$0xff]  ;;  %v52_v0 = vld [vmem:[#allocation4 + $0xc0] sm:$0xff]  ;;  %v53_v2 = vld [vmem:[#allocation4 + $0xc8] sm:$0xff] }
  0x1c   :  { %v288_v17 = vadd.f32 %v653_v5, %v158_v4  ;;  %v289_v18 = vadd.f32 %v653_v5, %v159_v6  ;;  %v290_v19 = vadd.f32 %v653_v5, %v160_v7  ;;  %v165_v27 = vmul.f32 %v650_v1, %v35_v15  ;;  %v54_v3 = vld [vmem:[#allocation4 + $0xd0] sm:$0xff]  ;;  %v55_v9 = vld [vmem:[#allocation4 + $0xd8] sm:$0xff]  ;;  %v56_v10 = vld [vmem:[#allocation4 + $0xe0] sm:$0xff] }
  0x1d   :  { %v291_v24 = vadd.f32 %v653_v5, %v161_v11  ;;  %v292_v25 = vadd.f32 %v653_v5, %v162_v12  ;;  %v293_v26 = vadd.f32 %v653_v5, %v163_v13  ;;  %v294_v31 = vadd.f32 %v653_v5, %v164_v20  ;;  %v57_v11 = vld [vmem:[#allocation4 + $0xe8] sm:$0xff] }
  0x1e   :  { %416 = vst [vmem:[#allocation7] sm:$0xff] %v288_v17  ;;  %417 = vst [vmem:[#allocation7 + $0x8] sm:$0xff] %v289_v18  ;;  %v166_v32 = vmul.f32 %v650_v1, %v36_v16  ;;  %v167_v33 = vmul.f32 %v650_v1, %v37_v21  ;;  %v168_v34 = vmul.f32 %v650_v1, %v38_v22  ;;  %v58_v16 = vld [vmem:[#allocation4 + $0xf0] sm:$0xff]  ;;  %v59_v21 = vld [vmem:[#allocation4 + $0xf8] sm:$0xff] }
  0x1f   :  { %418 = vst [vmem:[#allocation7 + $0x10] sm:$0xff] %v290_v19  ;;  %419 = vst [vmem:[#allocation7 + $0x18] sm:$0xff] %v291_v24  ;;  %v295_v36 = vadd.f32 %v653_v5, %v165_v27  ;;  %v169_v37 = vmul.f32 %v650_v1, %v39_v23  ;;  %v170_v38 = vmul.f32 %v650_v1, %v40_v28  ;;  %v61_v27 = vld [vmem:[#allocation4 + $0x108] sm:$0xff]  ;;  %v62_v28 = vld [vmem:[#allocation4 + $0x110] sm:$0xff] }
  0x20   :  { %420 = vst [vmem:[#allocation7 + $0x20] sm:$0xff] %v292_v25  ;;  %421 = vst [vmem:[#allocation7 + $0x28] sm:$0xff] %v293_v26  ;;  %v171_v39 = vmul.f32 %v650_v1, %v41_v29  ;;  %v296_v43 = vadd.f32 %v653_v5, %v166_v32  ;;  %v297_v44 = vadd.f32 %v653_v5, %v167_v33  ;;  %v60_v26 = vld [vmem:[#allocation4 + $0x100] sm:$0xff]  ;;  %v63_v33 = vld [vmem:[#allocation4 + $0x118] sm:$0xff] }
  0x21   :  { %422 = vst [vmem:[#allocation7 + $0x30] sm:$0xff] %v294_v31  ;;  %v298_v45 = vadd.f32 %v653_v5, %v168_v34  ;;  %v172_v46 = vmul.f32 %v650_v1, %v42_v30  ;;  %423 = vst [vmem:[#allocation7 + $0x38] sm:$0xff] %v295_v36  ;;  %v299_v50 = vadd.f32 %v653_v5, %v169_v37  ;;  %v64_v34 = vld [vmem:[#allocation4 + $0x120] sm:$0xff] }
  0x22   :  { %v300_v51 = vadd.f32 %v653_v5, %v170_v38  ;;  %v301_v52 = vadd.f32 %v653_v5, %v171_v39  ;;  %v173_v53 = vmul.f32 %v650_v1, %v43_v35  ;;  %424 = vst [vmem:[#allocation7 + $0x40] sm:$0xff] %v296_v43  ;;  %425 = vst [vmem:[#allocation7 + $0x48] sm:$0xff] %v297_v44  ;;  %v65_v35 = vld [vmem:[#allocation4 + $0x128] sm:$0xff] }
  0x23   :  { %426 = vst [vmem:[#allocation7 + $0x50] sm:$0xff] %v298_v45  ;;  %v302_v55 = vadd.f32 %v653_v5, %v172_v46  ;;  %v174_v56 = vmul.f32 %v650_v1, %v44_v40  ;;  %v175_v57 = vmul.f32 %v650_v1, %v45_v41  ;;  %v176_v58 = vmul.f32 %v650_v1, %v46_v42  ;;  %v66_v40 = vld [vmem:[#allocation4 + $0x130] sm:$0xff]  ;;  %v67_v45 = vld [vmem:[#allocation4 + $0x138] sm:$0xff] }
  0x24   :  { %427 = vst [vmem:[#allocation7 + $0x58] sm:$0xff] %v299_v50  ;;  %428 = vst [vmem:[#allocation7 + $0x60] sm:$0xff] %v300_v51  ;;  %v303_v60 = vadd.f32 %v653_v5, %v173_v53  ;;  %v177_v61 = vmul.f32 %v650_v1, %v47_v47  ;;  %v178_v62 = vmul.f32 %v650_v1, %v48_v48  ;;  %v68_v50 = vld [vmem:[#allocation4 + $0x140] sm:$0xff]  ;;  %v69_v51 = vld [vmem:[#allocation4 + $0x148] sm:$0xff] }
  0x25   :  { %429 = vst [vmem:[#allocation7 + $0x68] sm:$0xff] %v301_v52  ;;  %v179_v63 = vmul.f32 %v650_v1, %v49_v49  ;;  %430 = vst [vmem:[#allocation7 + $0x70] sm:$0xff] %v302_v55  ;;  %v304_v4 = vadd.f32 %v653_v5, %v174_v56  ;;  %v305_v6 = vadd.f32 %v653_v5, %v175_v57  ;;  %v70_v52 = vld [vmem:[#allocation4 + $0x150] sm:$0xff]  ;;  %v71_v57 = vld [vmem:[#allocation4 + $0x158] sm:$0xff] }
  0x26   :  { %v306_v7 = vadd.f32 %v653_v5, %v176_v58  ;;  %v180_v8 = vmul.f32 %v650_v1, %v50_v54  ;;  %431 = vst [vmem:[#allocation7 + $0x78] sm:$0xff] %v303_v60  ;;  %v307_v12 = vadd.f32 %v653_v5, %v177_v61  ;;  %v308_v13 = vadd.f32 %v653_v5, %v178_v62  ;;  %v72_v58 = vld [vmem:[#allocation4 + $0x160] sm:$0xff] }
  0x27   :  { %v309_v14 = vadd.f32 %v653_v5, %v179_v63  ;;  %v181_v15 = vmul.f32 %v650_v1, %v51_v59  ;;  %432 = vst [vmem:[#allocation7 + $0x80] sm:$0xff] %v304_v4  ;;  %433 = vst [vmem:[#allocation7 + $0x88] sm:$0xff] %v305_v6  ;;  %v182_v18 = vmul.f32 %v650_v1, %v52_v0  ;;  %v73_v59 = vld [vmem:[#allocation4 + $0x168] sm:$0xff]  ;;  %v74_v0 = vld [vmem:[#allocation4 + $0x170] sm:$0xff] }
  0x28   :  { %434 = vst [vmem:[#allocation7 + $0x90] sm:$0xff] %v306_v7  ;;  %v310_v17 = vadd.f32 %v653_v5, %v180_v8  ;;  %v183_v19 = vmul.f32 %v650_v1, %v53_v2  ;;  %v184_v20 = vmul.f32 %v650_v1, %v54_v3  ;;  %435 = vst [vmem:[#allocation7 + $0x98] sm:$0xff] %v307_v12  ;;  %v75_v7 = vld [vmem:[#allocation4 + $0x178] sm:$0xff]  ;;  %v76_v12 = vld [vmem:[#allocation4 + $0x180] sm:$0xff] }
  0x29   :  { %436 = vst [vmem:[#allocation7 + $0xa0] sm:$0xff] %v308_v13  ;;  %437 = vst [vmem:[#allocation7 + $0xa8] sm:$0xff] %v309_v14  ;;  %v311_v22 = vadd.f32 %v653_v5, %v181_v15  ;;  %v185_v23 = vmul.f32 %v650_v1, %v55_v9  ;;  %v186_v24 = vmul.f32 %v650_v1, %v56_v10  ;;  %v77_v13 = vld [vmem:[#allocation4 + $0x188] sm:$0xff]  ;;  %v78_v14 = vld [vmem:[#allocation4 + $0x190] sm:$0xff] }
  0x2a   :  { %v187_v25 = vmul.f32 %v650_v1, %v57_v11  ;;  %438 = vst [vmem:[#allocation7 + $0xb0] sm:$0xff] %v310_v17  ;;  %v312_v29 = vadd.f32 %v653_v5, %v182_v18  ;;  %v313_v30 = vadd.f32 %v653_v5, %v183_v19  ;;  %v314_v31 = vadd.f32 %v653_v5, %v184_v20  ;;  %v79_v19 = vld [vmem:[#allocation4 + $0x198] sm:$0xff]  ;;  %v80_v20 = vld [vmem:[#allocation4 + $0x1a0] sm:$0xff] }
  0x2b   :  { %v188_v32 = vmul.f32 %v650_v1, %v58_v16  ;;  %439 = vst [vmem:[#allocation7 + $0xb8] sm:$0xff] %v311_v22  ;;  %v315_v36 = vadd.f32 %v653_v5, %v185_v23  ;;  %v316_v37 = vadd.f32 %v653_v5, %v186_v24  ;;  %v189_v39 = vmul.f32 %v650_v1, %v59_v21  ;;  %v81_v21 = vld [vmem:[#allocation4 + $0x1a8] sm:$0xff] }
  0x2c   :  { %v317_v38 = vadd.f32 %v653_v5, %v187_v25  ;;  %440 = vst [vmem:[#allocation7 + $0xc0] sm:$0xff] %v312_v29  ;;  %441 = vst [vmem:[#allocation7 + $0xc8] sm:$0xff] %v313_v30  ;;  %v190_v42 = vmul.f32 %v650_v1, %v60_v26  ;;  %v191_v43 = vmul.f32 %v650_v1, %v61_v27  ;;  %v82_v26 = vld [vmem:[#allocation4 + $0x1b0] sm:$0xff] }
  0x2d   :  { %442 = vst [vmem:[#allocation7 + $0xd0] sm:$0xff] %v314_v31  ;;  %v318_v41 = vadd.f32 %v653_v5, %v188_v32  ;;  %v192_v44 = vmul.f32 %v650_v1, %v62_v28  ;;  %443 = vst [vmem:[#allocation7 + $0xd8] sm:$0xff] %v315_v36  ;;  %v319_v46 = vadd.f32 %v653_v5, %v189_v39  ;;  %v83_v31 = vld [vmem:[#allocation4 + $0x1b8] sm:$0xff]  ;;  %v84_v36 = vld [vmem:[#allocation4 + $0x1c0] sm:$0xff] }
  0x2e   :  { %444 = vst [vmem:[#allocation7 + $0xe0] sm:$0xff] %v316_v37  ;;  %445 = vst [vmem:[#allocation7 + $0xe8] sm:$0xff] %v317_v38  ;;  %v193_v47 = vmul.f32 %v650_v1, %v63_v33  ;;  %v194_v48 = vmul.f32 %v650_v1, %v64_v34  ;;  %v195_v49 = vmul.f32 %v650_v1, %v65_v35  ;;  %v85_v37 = vld [vmem:[#allocation4 + $0x1c8] sm:$0xff]  ;;  %v86_v38 = vld [vmem:[#allocation4 + $0x1d0] sm:$0xff] }
  0x2f   :  { %446 = vst [vmem:[#allocation7 + $0xf0] sm:$0xff] %v318_v41  ;;  %v320_v53 = vadd.f32 %v653_v5, %v190_v42  ;;  %v321_v54 = vadd.f32 %v653_v5, %v191_v43  ;;  %v322_v55 = vadd.f32 %v653_v5, %v192_v44  ;;  %v196_v56 = vmul.f32 %v650_v1, %v66_v40  ;;  %v87_v43 = vld [vmem:[#allocation4 + $0x1d8] sm:$0xff]  ;;  %v88_v44 = vld [vmem:[#allocation4 + $0x1e0] sm:$0xff] }
  0x30   :  { %447 = vst [vmem:[#allocation7 + $0xf8] sm:$0xff] %v319_v46  ;;  %v323_v60 = vadd.f32 %v653_v5, %v193_v47  ;;  %v324_v61 = vadd.f32 %v653_v5, %v194_v48  ;;  %v325_v62 = vadd.f32 %v653_v5, %v195_v49  ;;  %v197_v63 = vmul.f32 %v650_v1, %v67_v45  ;;  %v89_v45 = vld [vmem:[#allocation4 + $0x1e8] sm:$0xff] }
  0x31   :  { %448 = vst [vmem:[#allocation7 + $0x100] sm:$0xff] %v320_v53  ;;  %449 = vst [vmem:[#allocation7 + $0x108] sm:$0xff] %v321_v54  ;;  %v326_v2 = vadd.f32 %v653_v5, %v196_v56  ;;  %v198_v3 = vmul.f32 %v650_v1, %v68_v50  ;;  %v199_v4 = vmul.f32 %v650_v1, %v69_v51  ;;  %v90_v50 = vld [vmem:[#allocation4 + $0x1f0] sm:$0xff] }
  0x32   :  { %450 = vst [vmem:[#allocation7 + $0x110] sm:$0xff] %v322_v55  ;;  %v200_v6 = vmul.f32 %v650_v1, %v70_v52  ;;  %451 = vst [vmem:[#allocation7 + $0x118] sm:$0xff] %v323_v60  ;;  %v327_v8 = vadd.f32 %v653_v5, %v197_v63  ;;  %v201_v9 = vmul.f32 %v650_v1, %v71_v57  ;;  %v91_v55 = vld [vmem:[#allocation4 + $0x1f8] sm:$0xff]  ;;  %v92_v60 = vld [vmem:[#allocation4 + $0x200] sm:$0xff] }
  0x33   :  { %452 = vst [vmem:[#allocation7 + $0x120] sm:$0xff] %v324_v61  ;;  %453 = vst [vmem:[#allocation7 + $0x128] sm:$0xff] %v325_v62  ;;  %v202_v10 = vmul.f32 %v650_v1, %v72_v58  ;;  %v203_v11 = vmul.f32 %v650_v1, %v73_v59  ;;  %v328_v15 = vadd.f32 %v653_v5, %v198_v3  ;;  %v93_v61 = vld [vmem:[#allocation4 + $0x208] sm:$0xff]  ;;  %v94_v62 = vld [vmem:[#allocation4 + $0x210] sm:$0xff] }
  0x34   :  { %454 = vst [vmem:[#allocation7 + $0x130] sm:$0xff] %v326_v2  ;;  %v329_v16 = vadd.f32 %v653_v5, %v199_v4  ;;  %v330_v17 = vadd.f32 %v653_v5, %v200_v6  ;;  %v204_v18 = vmul.f32 %v650_v1, %v74_v0  ;;  %455 = vst [vmem:[#allocation7 + $0x138] sm:$0xff] %v327_v8  ;;  %v95_v4 = vld [vmem:[#allocation4 + $0x218] sm:$0xff]  ;;  %v96_v6 = vld [vmem:[#allocation4 + $0x220] sm:$0xff] }
  0x35   :  { %v331_v22 = vadd.f32 %v653_v5, %v201_v9  ;;  %v332_v23 = vadd.f32 %v653_v5, %v202_v10  ;;  %v333_v24 = vadd.f32 %v653_v5, %v203_v11  ;;  %v205_v25 = vmul.f32 %v650_v1, %v75_v7  ;;  %456 = vst [vmem:[#allocation7 + $0x140] sm:$0xff] %v328_v15  ;;  %v97_v7 = vld [vmem:[#allocation4 + $0x228] sm:$0xff] }
  0x36   :  { %457 = vst [vmem:[#allocation7 + $0x148] sm:$0xff] %v329_v16  ;;  %458 = vst [vmem:[#allocation7 + $0x150] sm:$0xff] %v330_v17  ;;  %v334_v27 = vadd.f32 %v653_v5, %v204_v18  ;;  %v206_v28 = vmul.f32 %v650_v1, %v76_v12  ;;  %v207_v29 = vmul.f32 %v650_v1, %v77_v13  ;;  %v98_v12 = vld [vmem:[#allocation4 + $0x230] sm:$0xff]  ;;  %v99_v17 = vld [vmem:[#allocation4 + $0x238] sm:$0xff] }
  0x37   :  { %v208_v30 = vmul.f32 %v650_v1, %v78_v14  ;;  %459 = vst [vmem:[#allocation7 + $0x158] sm:$0xff] %v331_v22  ;;  %460 = vst [vmem:[#allocation7 + $0x160] sm:$0xff] %v332_v23  ;;  %v335_v32 = vadd.f32 %v653_v5, %v205_v25  ;;  %v209_v33 = vmul.f32 %v650_v1, %v79_v19  ;;  %v100_v22 = vld [vmem:[#allocation4 + $0x240] sm:$0xff]  ;;  %v101_v23 = vld [vmem:[#allocation4 + $0x248] sm:$0xff] }
  0x38   :  { %461 = vst [vmem:[#allocation7 + $0x168] sm:$0xff] %v333_v24  ;;  %v210_v34 = vmul.f32 %v650_v1, %v80_v20  ;;  %v211_v35 = vmul.f32 %v650_v1, %v81_v21  ;;  %462 = vst [vmem:[#allocation7 + $0x170] sm:$0xff] %v334_v27  ;;  %v336_v39 = vadd.f32 %v653_v5, %v206_v28  ;;  %v102_v24 = vld [vmem:[#allocation4 + $0x250] sm:$0xff] }
  0x39   :  { %v337_v40 = vadd.f32 %v653_v5, %v207_v29  ;;  %v338_v41 = vadd.f32 %v653_v5, %v208_v30  ;;  %v212_v42 = vmul.f32 %v650_v1, %v82_v26  ;;  %463 = vst [vmem:[#allocation7 + $0x178] sm:$0xff] %v335_v32  ;;  %v339_v46 = vadd.f32 %v653_v5, %v209_v33  ;;  %v103_v29 = vld [vmem:[#allocation4 + $0x258] sm:$0xff]  ;;  %v104_v30 = vld [vmem:[#allocation4 + $0x260] sm:$0xff] }
  0x3a   :  { %v340_v47 = vadd.f32 %v653_v5, %v210_v34  ;;  %v341_v48 = vadd.f32 %v653_v5, %v211_v35  ;;  %v213_v49 = vmul.f32 %v650_v1, %v83_v31  ;;  %464 = vst [vmem:[#allocation7 + $0x180] sm:$0xff] %v336_v39  ;;  %v214_v52 = vmul.f32 %v650_v1, %v84_v36  ;;  %v105_v31 = vld [vmem:[#allocation4 + $0x268] sm:$0xff]  ;;  %v106_v36 = vld [vmem:[#allocation4 + $0x270] sm:$0xff] }
  0x3b   :  { %465 = vst [vmem:[#allocation7 + $0x188] sm:$0xff] %v337_v40  ;;  %466 = vst [vmem:[#allocation7 + $0x190] sm:$0xff] %v338_v41  ;;  %v342_v51 = vadd.f32 %v653_v5, %v212_v42  ;;  %v215_v53 = vmul.f32 %v650_v1, %v85_v37  ;;  %v216_v54 = vmul.f32 %v650_v1, %v86_v38  ;;  %v107_v41 = vld [vmem:[#allocation4 + $0x278] sm:$0xff] }
  0x3c   :  { %467 = vst [vmem:[#allocation7 + $0x198] sm:$0xff] %v339_v46  ;;  %468 = vst [vmem:[#allocation7 + $0x1a0] sm:$0xff] %v340_v47  ;;  %v343_v56 = vadd.f32 %v653_v5, %v213_v49  ;;  %v217_v57 = vmul.f32 %v650_v1, %v87_v43  ;;  %v218_v58 = vmul.f32 %v650_v1, %v88_v44  ;;  %v108_v46 = vld [vmem:[#allocation4 + $0x280] sm:$0xff]  ;;  %v109_v47 = vld [vmem:[#allocation4 + $0x288] sm:$0xff] }
  0x3d   :  { %469 = vst [vmem:[#allocation7 + $0x1a8] sm:$0xff] %v341_v48  ;;  %v219_v59 = vmul.f32 %v650_v1, %v89_v45  ;;  %470 = vst [vmem:[#allocation7 + $0x1b0] sm:$0xff] %v342_v51  ;;  %v344_v63 = vadd.f32 %v653_v5, %v214_v52  ;;  %v345_v0 = vadd.f32 %v653_v5, %v215_v53  ;;  %v110_v48 = vld [vmem:[#allocation4 + $0x290] sm:$0xff]  ;;  %v111_v53 = vld [vmem:[#allocation4 + $0x298] sm:$0xff] }
  0x3e   :  { %v346_v2 = vadd.f32 %v653_v5, %v216_v54  ;;  %v220_v3 = vmul.f32 %v650_v1, %v90_v50  ;;  %471 = vst [vmem:[#allocation7 + $0x1b8] sm:$0xff] %v343_v56  ;;  %v347_v8 = vadd.f32 %v653_v5, %v217_v57  ;;  %v348_v9 = vadd.f32 %v653_v5, %v218_v58  ;;  %v112_v54 = vld [vmem:[#allocation4 + $0x2a0] sm:$0xff] }
  0x3f   :  { %v349_v10 = vadd.f32 %v653_v5, %v219_v59  ;;  %v221_v11 = vmul.f32 %v650_v1, %v91_v55  ;;  %472 = vst [vmem:[#allocation7 + $0x1c0] sm:$0xff] %v344_v63  ;;  %473 = vst [vmem:[#allocation7 + $0x1c8] sm:$0xff] %v345_v0  ;;  %v222_v14 = vmul.f32 %v650_v1, %v92_v60  ;;  %v113_v55 = vld [vmem:[#allocation4 + $0x2a8] sm:$0xff]  ;;  %v114_v60 = vld [vmem:[#allocation4 + $0x2b0] sm:$0xff] }
  0x40   :  { %474 = vst [vmem:[#allocation7 + $0x1d0] sm:$0xff] %v346_v2  ;;  %v350_v13 = vadd.f32 %v653_v5, %v220_v3  ;;  %v223_v15 = vmul.f32 %v650_v1, %v93_v61  ;;  %v224_v16 = vmul.f32 %v650_v1, %v94_v62  ;;  %475 = vst [vmem:[#allocation7 + $0x1d8] sm:$0xff] %v347_v8  ;;  %v115_v2 = vld [vmem:[#allocation4 + $0x2b8] sm:$0xff]  ;;  %v116_v8 = vld [vmem:[#allocation4 + $0x2c0] sm:$0xff] }
  0x41   :  { %476 = vst [vmem:[#allocation7 + $0x1e0] sm:$0xff] %v348_v9  ;;  %477 = vst [vmem:[#allocation7 + $0x1e8] sm:$0xff] %v349_v10  ;;  %v351_v18 = vadd.f32 %v653_v5, %v221_v11  ;;  %v225_v19 = vmul.f32 %v650_v1, %v95_v4  ;;  %v226_v20 = vmul.f32 %v650_v1, %v96_v6  ;;  %v117_v9 = vld [vmem:[#allocation4 + $0x2c8] sm:$0xff]  ;;  %v118_v10 = vld [vmem:[#allocation4 + $0x2d0] sm:$0xff] }
  0x42   :  { %v227_v21 = vmul.f32 %v650_v1, %v97_v7  ;;  %478 = vst [vmem:[#allocation7 + $0x1f0] sm:$0xff] %v350_v13  ;;  %v352_v25 = vadd.f32 %v653_v5, %v222_v14  ;;  %v353_v26 = vadd.f32 %v653_v5, %v223_v15  ;;  %v354_v27 = vadd.f32 %v653_v5, %v224_v16  ;;  %v119_v15 = vld [vmem:[#allocation4 + $0x2d8] sm:$0xff]  ;;  %v120_v16 = vld [vmem:[#allocation4 + $0x2e0] sm:$0xff] }
  0x43   :  { %v228_v28 = vmul.f32 %v650_v1, %v98_v12  ;;  %479 = vst [vmem:[#allocation7 + $0x1f8] sm:$0xff] %v351_v18  ;;  %v355_v32 = vadd.f32 %v653_v5, %v225_v19  ;;  %v356_v33 = vadd.f32 %v653_v5, %v226_v20  ;;  %v229_v35 = vmul.f32 %v650_v1, %v99_v17  ;;  %v121_v17 = vld [vmem:[#allocation4 + $0x2e8] sm:$0xff] }
  0x44   :  { %v357_v34 = vadd.f32 %v653_v5, %v227_v21  ;;  %480 = vst [vmem:[#allocation7 + $0x200] sm:$0xff] %v352_v25  ;;  %481 = vst [vmem:[#allocation7 + $0x208] sm:$0xff] %v353_v26  ;;  %v230_v38 = vmul.f32 %v650_v1, %v100_v22  ;;  %v231_v39 = vmul.f32 %v650_v1, %v101_v23  ;;  %v122_v22 = vld [vmem:[#allocation4 + $0x2f0] sm:$0xff] }
  0x45   :  { %482 = vst [vmem:[#allocation7 + $0x210] sm:$0xff] %v354_v27  ;;  %v358_v37 = vadd.f32 %v653_v5, %v228_v28  ;;  %v232_v40 = vmul.f32 %v650_v1, %v102_v24  ;;  %483 = vst [vmem:[#allocation7 + $0x218] sm:$0xff] %v355_v32  ;;  %v359_v42 = vadd.f32 %v653_v5, %v229_v35  ;;  %v123_v27 = vld [vmem:[#allocation4 + $0x2f8] sm:$0xff]  ;;  %v124_v32 = vld [vmem:[#allocation4 + $0x300] sm:$0xff] }
  0x46   :  { %484 = vst [vmem:[#allocation7 + $0x220] sm:$0xff] %v356_v33  ;;  %485 = vst [vmem:[#allocation7 + $0x228] sm:$0xff] %v357_v34  ;;  %v233_v43 = vmul.f32 %v650_v1, %v103_v29  ;;  %v234_v44 = vmul.f32 %v650_v1, %v104_v30  ;;  %v235_v45 = vmul.f32 %v650_v1, %v105_v31  ;;  %v125_v33 = vld [vmem:[#allocation4 + $0x308] sm:$0xff]  ;;  %v126_v34 = vld [vmem:[#allocation4 + $0x310] sm:$0xff] }
  0x47   :  { %486 = vst [vmem:[#allocation7 + $0x230] sm:$0xff] %v358_v37  ;;  %v360_v49 = vadd.f32 %v653_v5, %v230_v38  ;;  %v361_v50 = vadd.f32 %v653_v5, %v231_v39  ;;  %v362_v51 = vadd.f32 %v653_v5, %v232_v40  ;;  %v236_v52 = vmul.f32 %v650_v1, %v106_v36  ;;  %v127_v39 = vld [vmem:[#allocation4 + $0x318] sm:$0xff]  ;;  %v128_v40 = vld [vmem:[#allocation4 + $0x320] sm:$0xff] }
  0x48   :  { %487 = vst [vmem:[#allocation7 + $0x238] sm:$0xff] %v359_v42  ;;  %v363_v56 = vadd.f32 %v653_v5, %v233_v43  ;;  %v364_v57 = vadd.f32 %v653_v5, %v234_v44  ;;  %v365_v58 = vadd.f32 %v653_v5, %v235_v45  ;;  %v237_v59 = vmul.f32 %v650_v1, %v107_v41  ;;  %v129_v41 = vld [vmem:[#allocation4 + $0x328] sm:$0xff] }
  0x49   :  { %488 = vst [vmem:[#allocation7 + $0x240] sm:$0xff] %v360_v49  ;;  %489 = vst [vmem:[#allocation7 + $0x248] sm:$0xff] %v361_v50  ;;  %v366_v61 = vadd.f32 %v653_v5, %v236_v52  ;;  %v238_v62 = vmul.f32 %v650_v1, %v108_v46  ;;  %v239_v63 = vmul.f32 %v650_v1, %v109_v47  ;;  %v130_v46 = vld [vmem:[#allocation4 + $0x330] sm:$0xff] }
  0x4a   :  { %490 = vst [vmem:[#allocation7 + $0x250] sm:$0xff] %v362_v51  ;;  %v240_v0 = vmul.f32 %v650_v1, %v110_v48  ;;  %491 = vst [vmem:[#allocation7 + $0x258] sm:$0xff] %v363_v56  ;;  %v367_v3 = vadd.f32 %v653_v5, %v237_v59  ;;  %v241_v4 = vmul.f32 %v650_v1, %v111_v53  ;;  %v131_v51 = vld [vmem:[#allocation4 + $0x338] sm:$0xff]  ;;  %v132_v56 = vld [vmem:[#allocation4 + $0x340] sm:$0xff] }
  0x4b   :  { %492 = vst [vmem:[#allocation7 + $0x260] sm:$0xff] %v364_v57  ;;  %493 = vst [vmem:[#allocation7 + $0x268] sm:$0xff] %v365_v58  ;;  %v242_v6 = vmul.f32 %v650_v1, %v112_v54  ;;  %v243_v7 = vmul.f32 %v650_v1, %v113_v55  ;;  %v368_v11 = vadd.f32 %v653_v5, %v238_v62  ;;  %v133_v57 = vld [vmem:[#allocation4 + $0x348] sm:$0xff]  ;;  %v134_v58 = vld [vmem:[#allocation4 + $0x350] sm:$0xff] }
  0x4c   :  { %494 = vst [vmem:[#allocation7 + $0x270] sm:$0xff] %v366_v61  ;;  %v369_v12 = vadd.f32 %v653_v5, %v239_v63  ;;  %v370_v13 = vadd.f32 %v653_v5, %v240_v0  ;;  %v244_v14 = vmul.f32 %v650_v1, %v114_v60  ;;  %495 = vst [vmem:[#allocation7 + $0x278] sm:$0xff] %v367_v3  ;;  %v135_v63 = vld [vmem:[#allocation4 + $0x358] sm:$0xff]  ;;  %v136_v0 = vld [vmem:[#allocation4 + $0x360] sm:$0xff] }
  0x4d   :  { %v371_v18 = vadd.f32 %v653_v5, %v241_v4  ;;  %v372_v19 = vadd.f32 %v653_v5, %v242_v6  ;;  %v373_v20 = vadd.f32 %v653_v5, %v243_v7  ;;  %v245_v21 = vmul.f32 %v650_v1, %v115_v2  ;;  %496 = vst [vmem:[#allocation7 + $0x280] sm:$0xff] %v368_v11  ;;  %v137_v2 = vld [vmem:[#allocation4 + $0x368] sm:$0xff] }
  0x4e   :  { %497 = vst [vmem:[#allocation7 + $0x288] sm:$0xff] %v369_v12  ;;  %498 = vst [vmem:[#allocation7 + $0x290] sm:$0xff] %v370_v13  ;;  %v374_v23 = vadd.f32 %v653_v5, %v244_v14  ;;  %v246_v24 = vmul.f32 %v650_v1, %v116_v8  ;;  %v247_v25 = vmul.f32 %v650_v1, %v117_v9  ;;  %v138_v8 = vld [vmem:[#allocation4 + $0x370] sm:$0xff]  ;;  %v139_v13 = vld [vmem:[#allocation4 + $0x378] sm:$0xff] }
  0x4f   :  { %v248_v26 = vmul.f32 %v650_v1, %v118_v10  ;;  %499 = vst [vmem:[#allocation7 + $0x298] sm:$0xff] %v371_v18  ;;  %500 = vst [vmem:[#allocation7 + $0x2a0] sm:$0xff] %v372_v19  ;;  %v375_v28 = vadd.f32 %v653_v5, %v245_v21  ;;  %v249_v29 = vmul.f32 %v650_v1, %v119_v15  ;;  %v140_v18 = vld [vmem:[#allocation4 + $0x380] sm:$0xff]  ;;  %v141_v19 = vld [vmem:[#allocation4 + $0x388] sm:$0xff] }
  0x50   :  { %501 = vst [vmem:[#allocation7 + $0x2a8] sm:$0xff] %v373_v20  ;;  %v250_v30 = vmul.f32 %v650_v1, %v120_v16  ;;  %v251_v31 = vmul.f32 %v650_v1, %v121_v17  ;;  %502 = vst [vmem:[#allocation7 + $0x2b0] sm:$0xff] %v374_v23  ;;  %v376_v35 = vadd.f32 %v653_v5, %v246_v24  ;;  %v142_v20 = vld [vmem:[#allocation4 + $0x390] sm:$0xff] }
  0x51   :  { %v377_v36 = vadd.f32 %v653_v5, %v247_v25  ;;  %v378_v37 = vadd.f32 %v653_v5, %v248_v26  ;;  %v252_v38 = vmul.f32 %v650_v1, %v122_v22  ;;  %503 = vst [vmem:[#allocation7 + $0x2b8] sm:$0xff] %v375_v28  ;;  %v379_v42 = vadd.f32 %v653_v5, %v249_v29  ;;  %v143_v25 = vld [vmem:[#allocation4 + $0x398] sm:$0xff]  ;;  %v144_v26 = vld [vmem:[#allocation4 + $0x3a0] sm:$0xff] }
  0x52   :  { %v380_v43 = vadd.f32 %v653_v5, %v250_v30  ;;  %v381_v44 = vadd.f32 %v653_v5, %v251_v31  ;;  %v253_v45 = vmul.f32 %v650_v1, %v123_v27  ;;  %504 = vst [vmem:[#allocation7 + $0x2c0] sm:$0xff] %v376_v35  ;;  %v254_v48 = vmul.f32 %v650_v1, %v124_v32  ;;  %v145_v27 = vld [vmem:[#allocation4 + $0x3a8] sm:$0xff]  ;;  %v146_v32 = vld [vmem:[#allocation4 + $0x3b0] sm:$0xff] }
  0x53   :  { %505 = vst [vmem:[#allocation7 + $0x2c8] sm:$0xff] %v377_v36  ;;  %506 = vst [vmem:[#allocation7 + $0x2d0] sm:$0xff] %v378_v37  ;;  %v382_v47 = vadd.f32 %v653_v5, %v252_v38  ;;  %v255_v49 = vmul.f32 %v650_v1, %v125_v33  ;;  %v256_v50 = vmul.f32 %v650_v1, %v126_v34  ;;  %v147_v37 = vld [vmem:[#allocation4 + $0x3b8] sm:$0xff] }
  0x54   :  { %507 = vst [vmem:[#allocation7 + $0x2d8] sm:$0xff] %v379_v42  ;;  %508 = vst [vmem:[#allocation7 + $0x2e0] sm:$0xff] %v380_v43  ;;  %v383_v52 = vadd.f32 %v653_v5, %v253_v45  ;;  %v257_v53 = vmul.f32 %v650_v1, %v127_v39  ;;  %v258_v54 = vmul.f32 %v650_v1, %v128_v40  ;;  %v148_v42 = vld [vmem:[#allocation4 + $0x3c0] sm:$0xff]  ;;  %v149_v43 = vld [vmem:[#allocation4 + $0x3c8] sm:$0xff] }
  0x55   :  { %509 = vst [vmem:[#allocation7 + $0x2e8] sm:$0xff] %v381_v44  ;;  %v259_v55 = vmul.f32 %v650_v1, %v129_v41  ;;  %510 = vst [vmem:[#allocation7 + $0x2f0] sm:$0xff] %v382_v47  ;;  %v384_v59 = vadd.f32 %v653_v5, %v254_v48  ;;  %v385_v60 = vadd.f32 %v653_v5, %v255_v49  ;;  %v150_v44 = vld [vmem:[#allocation4 + $0x3d0] sm:$0xff]  ;;  %v151_v49 = vld [vmem:[#allocation4 + $0x3d8] sm:$0xff] }
  0x56   :  { %v386_v61 = vadd.f32 %v653_v5, %v256_v50  ;;  %v260_v62 = vmul.f32 %v650_v1, %v130_v46  ;;  %511 = vst [vmem:[#allocation7 + $0x2f8] sm:$0xff] %v383_v52  ;;  %v387_v3 = vadd.f32 %v653_v5, %v257_v53  ;;  %v388_v4 = vadd.f32 %v653_v5, %v258_v54  ;;  %v152_v50 = vld [vmem:[#allocation4 + $0x3e0] sm:$0xff] }
  0x57   :  { %v389_v6 = vadd.f32 %v653_v5, %v259_v55  ;;  %v261_v7 = vmul.f32 %v650_v1, %v131_v51  ;;  %512 = vst [vmem:[#allocation7 + $0x300] sm:$0xff] %v384_v59  ;;  %513 = vst [vmem:[#allocation7 + $0x308] sm:$0xff] %v385_v60  ;;  %v262_v10 = vmul.f32 %v650_v1, %v132_v56  ;;  %v153_v51 = vld [vmem:[#allocation4 + $0x3e8] sm:$0xff]  ;;  %v154_v56 = vld [vmem:[#allocation4 + $0x3f0] sm:$0xff] }
  0x58   :  { %514 = vst [vmem:[#allocation7 + $0x310] sm:$0xff] %v386_v61  ;;  %v390_v9 = vadd.f32 %v653_v5, %v260_v62  ;;  %v263_v11 = vmul.f32 %v650_v1, %v133_v57  ;;  %v264_v12 = vmul.f32 %v650_v1, %v134_v58  ;;  %515 = vst [vmem:[#allocation7 + $0x318] sm:$0xff] %v387_v3  ;;  %v155_v61 = vld [vmem:[#allocation4 + $0x3f8] sm:$0xff] }
  0x59   :  { %516 = vst [vmem:[#allocation7 + $0x320] sm:$0xff] %v388_v4  ;;  %517 = vst [vmem:[#allocation7 + $0x328] sm:$0xff] %v389_v6  ;;  %v391_v14 = vadd.f32 %v653_v5, %v261_v7  ;;  %v265_v15 = vmul.f32 %v650_v1, %v135_v63  ;;  %v266_v16 = vmul.f32 %v650_v1, %v136_v0 }
  0x5a   :  { %v267_v17 = vmul.f32 %v650_v1, %v137_v2  ;;  %518 = vst [vmem:[#allocation7 + $0x330] sm:$0xff] %v390_v9  ;;  %v392_v21 = vadd.f32 %v653_v5, %v262_v10  ;;  %v393_v22 = vadd.f32 %v653_v5, %v263_v11  ;;  %v394_v23 = vadd.f32 %v653_v5, %v264_v12 }
  0x5b   :  { %v268_v24 = vmul.f32 %v650_v1, %v138_v8  ;;  %519 = vst [vmem:[#allocation7 + $0x338] sm:$0xff] %v391_v14  ;;  %v395_v28 = vadd.f32 %v653_v5, %v265_v15  ;;  %v396_v29 = vadd.f32 %v653_v5, %v266_v16  ;;  %v269_v31 = vmul.f32 %v650_v1, %v139_v13 }
  0x5c   :  { %v397_v30 = vadd.f32 %v653_v5, %v267_v17  ;;  %520 = vst [vmem:[#allocation7 + $0x340] sm:$0xff] %v392_v21  ;;  %521 = vst [vmem:[#allocation7 + $0x348] sm:$0xff] %v393_v22  ;;  %v270_v34 = vmul.f32 %v650_v1, %v140_v18  ;;  %v271_v35 = vmul.f32 %v650_v1, %v141_v19 }
  0x5d   :  { %522 = vst [vmem:[#allocation7 + $0x350] sm:$0xff] %v394_v23  ;;  %v398_v33 = vadd.f32 %v653_v5, %v268_v24  ;;  %v272_v36 = vmul.f32 %v650_v1, %v142_v20  ;;  %523 = vst [vmem:[#allocation7 + $0x358] sm:$0xff] %v395_v28  ;;  %v399_v38 = vadd.f32 %v653_v5, %v269_v31 }
  0x5e   :  { %524 = vst [vmem:[#allocation7 + $0x360] sm:$0xff] %v396_v29  ;;  %525 = vst [vmem:[#allocation7 + $0x368] sm:$0xff] %v397_v30  ;;  %v273_v39 = vmul.f32 %v650_v1, %v143_v25  ;;  %v274_v40 = vmul.f32 %v650_v1, %v144_v26  ;;  %v275_v41 = vmul.f32 %v650_v1, %v145_v27 }
  0x5f   :  { %526 = vst [vmem:[#allocation7 + $0x370] sm:$0xff] %v398_v33  ;;  %v400_v45 = vadd.f32 %v653_v5, %v270_v34  ;;  %v401_v46 = vadd.f32 %v653_v5, %v271_v35  ;;  %v402_v47 = vadd.f32 %v653_v5, %v272_v36  ;;  %v276_v48 = vmul.f32 %v650_v1, %v146_v32 }
  0x60   :  { %527 = vst [vmem:[#allocation7 + $0x378] sm:$0xff] %v399_v38  ;;  %v403_v52 = vadd.f32 %v653_v5, %v273_v39  ;;  %v404_v53 = vadd.f32 %v653_v5, %v274_v40  ;;  %v405_v54 = vadd.f32 %v653_v5, %v275_v41  ;;  %v277_v55 = vmul.f32 %v650_v1, %v147_v37 }
  0x61   :  { %528 = vst [vmem:[#allocation7 + $0x380] sm:$0xff] %v400_v45  ;;  %529 = vst [vmem:[#allocation7 + $0x388] sm:$0xff] %v401_v46  ;;  %v406_v57 = vadd.f32 %v653_v5, %v276_v48  ;;  %v278_v58 = vmul.f32 %v650_v1, %v148_v42  ;;  %v279_v59 = vmul.f32 %v650_v1, %v149_v43 }
  0x62   :  { %530 = vst [vmem:[#allocation7 + $0x390] sm:$0xff] %v402_v47  ;;  %v280_v60 = vmul.f32 %v650_v1, %v150_v44  ;;  %531 = vst [vmem:[#allocation7 + $0x398] sm:$0xff] %v403_v52  ;;  %v407_v62 = vadd.f32 %v653_v5, %v277_v55  ;;  %v281_v63 = vmul.f32 %v650_v1, %v151_v49 }
  0x63   :  { %532 = vst [vmem:[#allocation7 + $0x3a0] sm:$0xff] %v404_v53  ;;  %533 = vst [vmem:[#allocation7 + $0x3a8] sm:$0xff] %v405_v54  ;;  %v282_v0 = vmul.f32 %v650_v1, %v152_v50  ;;  %v283_v2 = vmul.f32 %v650_v1, %v153_v51  ;;  %v408_v3 = vadd.f32 %v653_v5, %v278_v58 }
  0x64   :  { %534 = vst [vmem:[#allocation7 + $0x3b0] sm:$0xff] %v406_v57  ;;  %v409_v4 = vadd.f32 %v653_v5, %v279_v59  ;;  %v410_v6 = vadd.f32 %v653_v5, %v280_v60  ;;  %v284_v7 = vmul.f32 %v650_v1, %v154_v56  ;;  %535 = vst [vmem:[#allocation7 + $0x3b8] sm:$0xff] %v407_v62 }
  0x65   :  { %v411_v8 = vadd.f32 %v653_v5, %v281_v63  ;;  %v412_v9 = vadd.f32 %v653_v5, %v282_v0  ;;  %v413_v10 = vadd.f32 %v653_v5, %v283_v2  ;;  %v285_v11 = vmul.f32 %v650_v1, %v155_v61  ;;  %536 = vst [vmem:[#allocation7 + $0x3c0] sm:$0xff] %v408_v3 }
  0x66   :  { %537 = vst [vmem:[#allocation7 + $0x3c8] sm:$0xff] %v409_v4  ;;  %538 = vst [vmem:[#allocation7 + $0x3d0] sm:$0xff] %v410_v6  ;;  %v414_v12 = vadd.f32 %v653_v5, %v284_v7 }
  0x67   :  { %539 = vst [vmem:[#allocation7 + $0x3d8] sm:$0xff] %v411_v8  ;;  %540 = vst [vmem:[#allocation7 + $0x3e0] sm:$0xff] %v412_v9  ;;  %v415_v13 = vadd.f32 %v653_v5, %v285_v11 }
  0x68   :  { %541 = vst [vmem:[#allocation7 + $0x3e8] sm:$0xff] %v413_v10  ;;  %542 = vst [vmem:[#allocation7 + $0x3f0] sm:$0xff] %v414_v12 }
  0x69   :  { %543 = vst [vmem:[#allocation7 + $0x3f8] sm:$0xff] %v415_v13 }
  0x6a   :  { %606 = shalt.err (!%p603_p9)
}
  0x6b   :  { %555 = dma.vmem_to_hbm [thread:$0]  %s550_s20, 16384, %s918_s2, [#allocation6], %s623_s15, %s623_s15, %s624_s16  }
  0x6c   :  { %619 = dma.done.wait [#allocation6], 16384  }
  0x6d   :  { %620 = vsyncadd [#allocation6], 4294950912 }
  0x6e   :  { %559 = vsyncpa [#allocation5], 1 }
  0x6f   :  { %560 = vsyncpa [#allocation6], 1 }

</bundles_post_ra>
